<compile_context>
chip_gen: v6e
topology: v6e:2x2x1
jax: 0.10.0
libtpu: 0.0.40
codegen_flags: <defaults>
</compile_context>

<pallas_src>
import functools
import math

import jax
import jax.numpy as jnp
import numpy as np
from jax.experimental import pallas as pl
from jax.experimental.pallas import tpu as pltpu


def eca_kernel_size(channel: int, gamma: int = 2, b: int = 1) -> int:
    t = int(abs(math.log(channel, 2) + b) / gamma)
    return t if t % 2 else t + 1


def _vmem_capacity_bytes() -> int:
    """Physical VMEM of the attached TPU; conservative (v7x) fallback."""
    try:
        return int(pltpu.get_tpu_info().vmem_capacity_bytes)
    except Exception:
        return 64 * 1024 * 1024


def _budgets():
    """(fused_slab_cap, two_pass_tile_target, vmem_limit) per generation."""
    cap = _vmem_capacity_bytes()
    if cap >= 128 * 1024 * 1024:            # v5e / v6e: 128 MiB VMEM
        return 16 * 1024 * 1024, 8 * 1024 * 1024, 96 * 1024 * 1024
    else:                                   # v7x: 64 MiB VMEM per TensorCore
        return 6 * 1024 * 1024, 4 * 1024 * 1024, 48 * 1024 * 1024


def _pick_hw_tile(C: int, HW: int, target_bytes: int, esize: int) -> int:
    """Largest multiple-of-128 spatial tile whose (C, T) block fits target."""
    if HW <= 128:
        return HW
    per_lane = C * max(esize, 4)            # f32 accumulator dominates
    max_lanes = max(128, target_bytes // per_lane)
    t = (min(HW, max_lanes) // 128) * 128
    return max(t, 128)


def _channel_conv_sigmoid(mean, w_ref, k):
    """mean: (C, 1) f32 pooled means.  k-tap same-padded conv over channels."""
    C = mean.shape[0]
    pad = k // 2
    if pad > 0:
        z = jnp.zeros((pad, 1), mean.dtype)
        y = jnp.concatenate([z, mean, z], axis=0)      # (C + 2*pad, 1)
    else:
        y = mean
    conv = w_ref[0] * y[0:C, :]
    for j in range(1, k):                              # k is tiny and static
        conv = conv + w_ref[j] * y[j:j + C, :]
    return jax.nn.sigmoid(conv)                        # (C, 1) f32


# --------------------------------------------------------------------------
# Fused single-pass kernel: whole (C, HW) slab per grid step.
# --------------------------------------------------------------------------
def _eca_fused_kernel(w_ref, x_ref, o_ref, *, hw, k):
    # w_ref: (k,) f32 SMEM; x_ref/o_ref: (1, C, HW) VMEM in x.dtype.
    x = x_ref[0]                                                   # (C, HW)
    mean = jnp.sum(x.astype(jnp.float32), axis=-1, keepdims=True) * (1.0 / hw)
    gate = _channel_conv_sigmoid(mean, w_ref, k)                   # (C, 1) f32
    o_ref[0] = (x * gate.astype(x.dtype)).astype(o_ref.dtype)


# --------------------------------------------------------------------------
# Two-pass fallback: pass 1 = pooled mean + conv + sigmoid -> gate (B, C, 1)
# --------------------------------------------------------------------------
def _pool_gate_kernel(w_ref, x_ref, gate_ref, acc_ref, *, hw, k, tile, mask_tail):
    # acc_ref: (C, T) f32 lane-wide partial sums (VPU adds only per step).
    t = pl.program_id(1)
    nt = pl.num_programs(1)

    @pl.when(t == 0)
    def _init():
        acc_ref[...] = jnp.zeros_like(acc_ref)

    x = x_ref[0].astype(jnp.float32)                               # (C, T)

    if mask_tail:
        @pl.when(t == nt - 1)
        def _tail():
            lane = jax.lax.broadcasted_iota(jnp.int32, x.shape, 1)
            acc_ref[...] += jnp.where(t * tile + lane < hw, x, 0.0)

        @pl.when(t != nt - 1)
        def _body():
            acc_ref[...] += x
    else:
        acc_ref[...] += x

    @pl.when(t == nt - 1)
    def _finalize():
        # Single cross-lane reduce, then the tiny k-tap conv + sigmoid.
        mean = jnp.sum(acc_ref[...], axis=-1, keepdims=True) * (1.0 / hw)
        gate_ref[0] = _channel_conv_sigmoid(mean, w_ref, k)        # (C, 1)


# --------------------------------------------------------------------------
# Two-pass fallback: pass 2 = out = x * gate  (lane-dense broadcast multiply)
# --------------------------------------------------------------------------
def _scale_kernel(gate_ref, x_ref, o_ref):
    g = gate_ref[...].astype(x_ref.dtype)                          # (1, C, 1)
    o_ref[...] = (x_ref[...] * g).astype(o_ref.dtype)


def eca_attention(x: jax.Array, conv_weight: jax.Array, *,
                  force_two_pass: bool = False, hw_tile=None) -> jax.Array:
    """x: (B, C, H, W); conv_weight: (k,) f32 (Conv1d(1, 1, k, bias=False))."""
    B, C, H, W = x.shape
    HW = H * W
    k = int(conv_weight.shape[0])
    w = conv_weight.astype(jnp.float32)

    xf = x.reshape(B, C, HW)                 # lane axis = H*W (layout plumbing)
    esize = jnp.dtype(x.dtype).itemsize

    fused_cap, tile_target, vmem_limit = _budgets()
    slab_bytes = C * HW * max(esize, 4)      # account for f32 intermediates

    # ---------------- fused single-pass path (2x HBM traffic) ----------------
    if (not force_two_pass) and slab_bytes <= fused_cap:
        out = pl.pallas_call(
            functools.partial(_eca_fused_kernel, hw=HW, k=k),
            out_shape=jax.ShapeDtypeStruct((B, C, HW), x.dtype),
            grid=(B,),
            in_specs=[
                pl.BlockSpec(memory_space=pltpu.SMEM),               # conv weight
                pl.BlockSpec((1, C, HW), lambda b: (b, 0, 0)),       # x slab
            ],
            out_specs=pl.BlockSpec((1, C, HW), lambda b: (b, 0, 0)),
            compiler_params=pltpu.CompilerParams(
                dimension_semantics=("parallel",),                   # megacore over B
                vmem_limit_bytes=vmem_limit),
            cost_estimate=pl.CostEstimate(
                flops=int(2 * B * C * HW + 2 * B * C * k),
                transcendentals=int(B * C),
                bytes_accessed=int(2 * B * C * HW * esize + k * 4)),
        )(w, xf)
        return out.reshape(B, C, H, W)

    # ---------------- two-pass fallback (oversized slabs) --------------------
    T = int(hw_tile) if hw_tile is not None else _pick_hw_tile(C, HW, tile_target, esize)
    n_t = pl.cdiv(HW, T)
    mask_tail = (HW % T) != 0

    # Pass 1: pooled mean over H*W + channel conv + sigmoid -> gate (B, C, 1).
    # TODO(synk): for v7x with B==1, add a channel-tile grid axis so the second
    # TensorCore is not idle during the reduction pass.
    gate = pl.pallas_call(
        functools.partial(_pool_gate_kernel, hw=HW, k=k, tile=T, mask_tail=mask_tail),
        out_shape=jax.ShapeDtypeStruct((B, C, 1), jnp.float32),
        grid=(B, n_t),
        in_specs=[
            pl.BlockSpec(memory_space=pltpu.SMEM),                   # conv weight
            pl.BlockSpec((1, C, T), lambda b, t: (b, 0, t)),         # x spatial tile
        ],
        out_specs=pl.BlockSpec((1, C, 1), lambda b, t: (b, 0, 0)),
        scratch_shapes=[pltpu.VMEM((C, T), jnp.float32)],            # lane-wide acc
        compiler_params=pltpu.CompilerParams(
            dimension_semantics=("parallel", "arbitrary"),
            vmem_limit_bytes=vmem_limit),
        cost_estimate=pl.CostEstimate(
            flops=int(B * C * HW + 2 * B * C * k),
            transcendentals=int(B * C),
            bytes_accessed=int(B * C * HW * esize + B * C * 4 + k * 4)),
    )(w, xf)

    # Pass 2: out = x * gate, spatially tiled, both grid axes parallel.
    out = pl.pallas_call(
        _scale_kernel,
        out_shape=jax.ShapeDtypeStruct((B, C, HW), x.dtype),
        grid=(B, n_t),
        in_specs=[
            pl.BlockSpec((1, C, 1), lambda b, t: (b, 0, 0)),         # gate (revisited)
            pl.BlockSpec((1, C, T), lambda b, t: (b, 0, t)),         # x spatial tile
        ],
        out_specs=pl.BlockSpec((1, C, T), lambda b, t: (b, 0, t)),
        compiler_params=pltpu.CompilerParams(
            dimension_semantics=("parallel", "parallel"),
            vmem_limit_bytes=vmem_limit),
        cost_estimate=pl.CostEstimate(
            flops=int(B * C * HW),
            transcendentals=0,
            bytes_accessed=int(2 * B * C * HW * esize + B * C * 4)),
    )(gate, xf)

    return out.reshape(B, C, H, W)


def eca_reference(x, conv_weight):
    # Pure-JAX reference mirroring the PyTorch forward (NCHW).
    B, C, H, W = x.shape
    y = jnp.mean(x, axis=(2, 3))                      # (B, C)
    k = conv_weight.shape[0]
    pad = k // 2
    y_pad = jnp.pad(y, ((0, 0), (pad, pad)))
    conv = sum(conv_weight[j] * y_pad[:, j:j + C] for j in range(k))
    gate = jax.nn.sigmoid(conv)                       # (B, C)
    return x * gate[:, :, None, None]


if __name__ == "__main__":
    key = jax.random.PRNGKey(0)
    kx, kw, kx2, kx3 = jax.random.split(key, 4)

    B, C, H, W = 2, 16, 16, 16                        # channel=16 -> k=3
    k = eca_kernel_size(C, gamma=2, b=1)
    bound = 1.0 / math.sqrt(k)
    conv_weight = jax.random.uniform(
        kw, (k,), jnp.float32, minval=-bound, maxval=bound)
    x = jax.random.normal(kx, (B, C, H, W), dtype=jnp.float32)

    fn = jax.jit(eca_attention, static_argnames=("force_two_pass", "hw_tile"))

    # 1) Fused single-pass path (slab fits VMEM budget).
    out = jax.block_until_ready(fn(x, conv_weight))
    ref = eca_reference(x, conv_weight)
    assert np.allclose(np.asarray(out), np.asarray(ref), atol=1e-5, rtol=1e-5)

    # 2) Two-pass fallback with masked spatial tail (HW=144, tile=128).
    x2 = jax.random.normal(kx2, (2, 16, 12, 12), dtype=jnp.float32)
    out2 = jax.block_until_ready(fn(x2, conv_weight, force_two_pass=True, hw_tile=128))
    ref2 = eca_reference(x2, conv_weight)
    assert np.allclose(np.asarray(out2), np.asarray(ref2), atol=1e-5, rtol=1e-5)

    # 3) bf16 activations on the fused path (halved HBM traffic; f32 gate math).
    x3 = jax.random.normal(kx3, (B, C, H, W), dtype=jnp.bfloat16)
    out3 = jax.block_until_ready(fn(x3, conv_weight))
    ref3 = eca_reference(x3.astype(jnp.float32), conv_weight)
    assert np.allclose(np.asarray(out3, dtype=np.float32), np.asarray(ref3),
                       atol=5e-2, rtol=5e-2)

    print("KERNEL_OK")
</pallas_src>

<mosaic_0001>
module attributes {stable_mosaic.version = 11 : i64} {
  func.func @_eca_fused_kernel(%arg0: i32, %arg1: memref<3xf32, #tpu.memory_space<smem>>, %arg2: memref<1x16x256xf32, #tpu.memory_space<vmem>>, %arg3: memref<1x16x256xf32, #tpu.memory_space<vmem>>) attributes {dimension_semantics = [#tpu.dimension_semantics<parallel>], iteration_bounds = array<i64: 2>, scalar_prefetch = 0 : i64, scratch_operands = 0 : i64, tpu.core_type = #tpu.core_type<tc>, window_params = [{transform_indices = @transform_0, window_bounds = array<i64: 3>}, {transform_indices = @transform_1, window_bounds = array<i64: 1, 16, 256>}, {transform_indices = @transform_2, window_bounds = array<i64: 1, 16, 256>}]} {
    %c0 = arith.constant 0 : index
    %c0_0 = arith.constant 0 : index
    %c0_1 = arith.constant 0 : index
    %0 = vector.load %arg2[%c0, %c0_0, %c0_1] : memref<1x16x256xf32, #tpu.memory_space<vmem>>, vector<1x16x256xf32>
    %1 = vector.shape_cast %0 : vector<1x16x256xf32> to vector<16x256xf32>
    %cst = arith.constant dense<0.000000e+00> : vector<16xf32>
    %2 = vector.multi_reduction <add>, %1, %cst [1] : vector<16x256xf32> to vector<16xf32>
    %3 = vector.shape_cast %2 : vector<16xf32> to vector<16x1xf32>
    %cst_2 = arith.constant 3.906250e-03 : f32
    %4 = vector.broadcast %cst_2 : f32 to vector<16x1xf32>
    %5 = arith.mulf %3, %4 : vector<16x1xf32>
    %cst_3 = arith.constant 0.000000e+00 : f32
    %6 = vector.broadcast %cst_3 : f32 to vector<1x1xf32>
    %7 = tpu.concatenate %6, %5, %6 in 0 : vector<1x1xf32>, vector<16x1xf32>, vector<1x1xf32> -> vector<18x1xf32>
    %c0_4 = arith.constant 0 : index
    %8 = memref.load %arg1[%c0_4] : memref<3xf32, #tpu.memory_space<smem>>
    %9 = vector.extract_strided_slice %7 {offsets = [0, 0], sizes = [16, 1], strides = [1, 1]} : vector<18x1xf32> to vector<16x1xf32>
    %10 = vector.broadcast %8 : f32 to vector<16x1xf32>
    %11 = arith.mulf %10, %9 : vector<16x1xf32>
    %c1 = arith.constant 1 : index
    %12 = memref.load %arg1[%c1] : memref<3xf32, #tpu.memory_space<smem>>
    %13 = vector.extract_strided_slice %7 {offsets = [1, 0], sizes = [16, 1], strides = [1, 1]} : vector<18x1xf32> to vector<16x1xf32>
    %14 = vector.broadcast %12 : f32 to vector<16x1xf32>
    %15 = arith.mulf %14, %13 : vector<16x1xf32>
    %16 = arith.addf %11, %15 : vector<16x1xf32>
    %c2 = arith.constant 2 : index
    %17 = memref.load %arg1[%c2] : memref<3xf32, #tpu.memory_space<smem>>
    %18 = vector.extract_strided_slice %7 {offsets = [2, 0], sizes = [16, 1], strides = [1, 1]} : vector<18x1xf32> to vector<16x1xf32>
    %19 = vector.broadcast %17 : f32 to vector<16x1xf32>
    %20 = arith.mulf %19, %18 : vector<16x1xf32>
    %21 = arith.addf %16, %20 : vector<16x1xf32>
    %22 = arith.negf %21 : vector<16x1xf32>
    %23 = math.exp %22 : vector<16x1xf32>
    %cst_5 = arith.constant 1.000000e+00 : f32
    %24 = vector.broadcast %cst_5 : f32 to vector<16x1xf32>
    %25 = arith.addf %24, %23 : vector<16x1xf32>
    %26 = arith.divf %24, %25 : vector<16x1xf32>
    %27 = vector.broadcast %26 : vector<16x1xf32> to vector<16x256xf32>
    %28 = arith.mulf %1, %27 : vector<16x256xf32>
    %c0_6 = arith.constant 0 : index
    %c0_7 = arith.constant 0 : index
    %c0_8 = arith.constant 0 : index
    %29 = vector.load %arg3[%c0_6, %c0_7, %c0_8] : memref<1x16x256xf32, #tpu.memory_space<vmem>>, vector<1x16x256xf32>
    %30 = vector.shape_cast %29 : vector<1x16x256xf32> to vector<16x256xf32>
    %31 = vector.shape_cast %28 : vector<16x256xf32> to vector<1x16x256xf32>
    tpu.vector_store %arg3[%c0_6, %c0_7, %c0_8], %31 {strides = array<i32>} : memref<1x16x256xf32, #tpu.memory_space<vmem>>, vector<1x16x256xf32>,
    return
  }
  func.func @transform_0(%arg0: i32) -> i32 {
    %c0_i32 = arith.constant 0 : i32
    %c0_i32_0 = arith.constant 0 : i32
    return %c0_i32 : i32
  }
  func.func @transform_1(%arg0: i32) -> (i32, i32, i32) {
    %c0_i32 = arith.constant 0 : i32
    %c0_i32_0 = arith.constant 0 : i32
    %c0_i32_1 = arith.constant 0 : i32
    return %arg0, %c0_i32, %c0_i32_0 : i32, i32, i32
  }
  func.func @transform_2(%arg0: i32) -> (i32, i32, i32) {
    %c0_i32 = arith.constant 0 : i32
    %c0_i32_0 = arith.constant 0 : i32
    %c0_i32_1 = arith.constant 0 : i32
    return %arg0, %c0_i32, %c0_i32_0 : i32, i32, i32
  }
}

</mosaic_0001>

<bundles_post_ra>
// kernel: eca_attention.1
= control target key start
LH: loop header
LB: loop body
LE: loop exit
PB: predicated region body
PF: predicated region fallthrough
CT: control target
= control target key end

     0   :  { %7 = vsyncpa [#allocation3], 0  ;;  %s411_s9 = smov 0   ;;  %s465_s0 = inlined_call_operand.vmem [shape: f32[3], index: 0, kind: input, shape index: {}]   ;;  %s466_s1 = inlined_call_operand.vmem [shape: f32[2,16,256], index: 1, kind: input, shape index: {}]   ;;  %s467_s2 = inlined_call_operand.vmem [shape: f32[2,16,256], index: 2, kind: output, shape index: {}]  }
   0x1 LB: > { %s318_s10 = sadd.s32 4294967295, %s392_s9   ;;  %p320_p0 = scmp.ge.s32.totalorder %s392_s9, 1  ;;  %s392_s9 = sphi %s411_s9, %s13_s9  }
   0x2   : > { %p91_p1 = scmp.lt.s32.totalorder %s392_s9, 3  ;;  %s104_s13 = sshll.u32 %s465_s0, 4  ;;  %s105_s13 = int_to_ptr.vmem [resolvable:$true] %s104_s13 }
   0x3   : > { %p345_p3 = scmp.eq.s32.totalorder %s318_s10, 0  ;;  %s367_s15 = scalar_lea.vmem %s105_s13, 16 }
   0x4   : > { %p422_p2 = pnand %p320_p0, %p91_p1  ;;  %p368_p6 = scmp.ne.s32.totalorder %s105_s13, %s367_s15 }
   0x5   : > { %p375_p10 = scmp.lt.s32.totalorder %s105_s13, %s105_s13  ;;  %p376_p11 = scmp.lt.s32.totalorder %s367_s15, %s367_s15 }
   0x6   : > { %p341_p4 = pneg %p422_p2 }
   0x7   : > { %p377_p12 = por %p376_p11, %p375_p10 }
   0x8   : > { %p342_p5 = pnand %p345_p3, %p341_p4 }
   0xa   : > { %p369_p7 = pneg %p342_p5 }
   0xc   : > { %p370_p8 = pnand %p369_p7, %p368_p6 }
   0xe   : > { %p371_p9 = pneg %p370_p8 }
  0x10   : > { %p378_p13 = pnand %p377_p12, %p371_p9 }
  0x12   : > { %381 = shalt.err (!%p378_p13)
}
  0x13   : > { %s394_s16 = smov [#allocation2]   ;;  %125 = sbr.rel (%p422_p2) target bundleno = 354 (0x162), region = 28 }
  0x14   : > { %344 = dma.vmem_to_smem (!%p342_p5), %s105_s13, 16, %s394_s16, [#allocation3]  }
  0x18   : > { %387 = dma.done.wait (%p345_p3), [#allocation3], 16  }
  0x19   : > { %389 = vsyncadd (%p345_p3), [#allocation3], 4294967280 }
  0x1a   : > { %131 = sfence }
  0x1b   : > { %p148_p0 = scmp.lt.s32.totalorder %s318_s10, 1  ;;  %v395_v6 = vmov 0   ;;  %s329_s21 = sld [smem:[#allocation2 + $0x1]]  ;;  %vm172_vm0 = vcmask 1040384   ;;  %vm193_vm1 = vcmask 1046528   ;;  %vm211_vm2 = vcmask 1045504  }
  0x1c   : > { %357 = vset.pattern.permute.xlu1 %v395_v6  ;;  %358 = vset.pattern.permute.xlu0 %v395_v6  ;;  %s330_s22 = sld [smem:[#allocation2 + $0x2]] }
  0x1d   : > { %s470_s10 = smov (!%p148_p0, %s318_s10), 1  ;;  %s181_s23 = sld [smem:[#allocation2]] }
  0x1e   : > { %s335_s17 = sshll.u32 %s470_s10, 5 }
  0x1f   : > { %s152_s20 = scalar_lea.vmem %s466_s1, %s335_s17  ;;  %s157_s26 = scalar_lea.vmem %s467_s2, %s335_s17 }
  0x20   : > { %v441_v0 = vld [vmem:[%s152_s20] sm:$0xff]  ;;  %v443_v1 = vld [vmem:[%s152_s20 + $0x8] sm:$0xff]  ;;  %v445_v2 = vld [vmem:[%s152_s20 + $0x10] sm:$0xff] }
  0x21   : > { %v162_v3 = vadd.f32 %v443_v1, %v441_v0  ;;  %v449_v4 = vld [vmem:[%s152_s20 + $0x18] sm:$0xff]  ;;  %v186_v11 = vstv %s329_s21 }
  0x22   : > { %v165_v5 = vadd.f32 %v449_v4, %v445_v2  ;;  %v204_v14 = vstv %s330_s22 }
  0x23   : > { %163 = vadd.xlane.f32.xlu0 %v162_v3  ;;  %v182_v17 = vstv %s181_s23 }
  0x27   : > { %166 = vadd.xlane.f32.xlu0 %v165_v5 }
  0xac   : > { %v164_v7 = vpop.xlane.xlu0 %163 }
  0xad   : > { %v168_v8 = vmul.f32 0.00390625, %v164_v7 }
  0xaf   : > { %v173_v9 = vrot.slane %v168_v8, 7 }
  0xb0   : > { %v167_v10 = vpop.xlane.xlu0 %166 }
  0xb1   : > { %v179_v12 = vsel %vm172_vm0, 0.0, %v173_v9  ;;  %v169_v13 = vmul.f32 0.00390625, %v167_v10 }
  0xb2   : > { %v187_v16 = vmul.f32 %v186_v11, %v179_v12  ;;  %v205_v20 = vmul.f32 %v204_v14, %v179_v12  ;;  %v183_v29 = vmul.f32 %v182_v17, %v179_v12 }
  0xb3   : > { %v174_v15 = vrot.slane %v169_v13, 7 }
  0xb4   : > { %v194_v25 = vrot.slane %v187_v16, 1  ;;  %v212_v32 = vrot.slane %v205_v20, 2 }
  0xb5   : > { %v175_v18 = vsel %vm172_vm0, %v173_v9, %v174_v15  ;;  %v180_v19 = vsel %vm172_vm0, %v174_v15, 0.0 }
  0xb6   : > { %v188_v21 = vmul.f32 %v186_v11, %v175_v18  ;;  %v189_v22 = vmul.f32 %v186_v11, %v180_v19  ;;  %v206_v23 = vmul.f32 %v204_v14, %v175_v18  ;;  %v207_v24 = vmul.f32 %v204_v14, %v180_v19 }
  0xb7   : > { %v184_v30 = vmul.f32 %v182_v17, %v175_v18 }
  0xb8   : > { %v195_v26 = vrot.slane %v188_v21, 1  ;;  %v197_v27 = vrot.slane %v189_v22, 1  ;;  %v213_v28 = vrot.slane %v206_v23, 2  ;;  %v215_v31 = vrot.slane %v207_v24, 2 }
  0xba   : > { %v196_v33 = vsel %vm193_vm1, %v194_v25, %v195_v26  ;;  %v198_v34 = vsel %vm193_vm1, %v195_v26, %v197_v27  ;;  %v214_v37 = vsel %vm211_vm2, %v212_v32, %v213_v28  ;;  %v216_v38 = vsel %vm211_vm2, %v213_v28, %v215_v31 }
  0xbb   : > { %v201_v35 = vadd.f32 %v196_v33, %v183_v29  ;;  %v202_v36 = vadd.f32 %v198_v34, %v184_v30 }
  0xbd   : > { %v219_v39 = vadd.f32 %v214_v37, %v201_v35  ;;  %v220_v40 = vadd.f32 %v216_v38, %v202_v36 }
  0xbf   : > { %v331_v41 = vmul.f32 -1.442695, %v219_v39  ;;  %v332_v42 = vmul.f32 -1.442695, %v220_v40 }
  0xc1   : > { %359 = vpow2.f32 %v331_v41 }
  0xc2   : > { %361 = vpow2.f32 %v332_v42 }
  0xce   : > { %v360_v43 = vpop.eup %359 }
  0xcf   : > { %v362_v44 = vpop.eup %361  ;;  %v227_v45 = vadd.f32 1.0, %v360_v43 }
  0xd0   : > { %v228_v46 = vadd.f32 1.0, %v362_v44 }
  0xd1   : > { %363 = vrcp.f32 %v227_v45 }
  0xd2   : > { %365 = vrcp.f32 %v228_v46 }
  0xde   : > { %v364_v47 = vpop.eup %363 }
  0xdf   : > { %235 = vperm.xlu1 %357, %v364_v47   ;;  %v366_v48 = vpop.eup %365 }
  0xe3   : > { %240 = vperm.xlu1 %357, %v366_v48  }
 0x15a   : > { %v236_v49 = vpop.permute.xlu1 %235 }
 0x15b   : > { %v243_v50 = vmul.f32 %v236_v49, %v441_v0  ;;  %v244_v51 = vmul.f32 %v236_v49, %v443_v1 }
 0x15d   : > { %247 = vst [vmem:[%s157_s26] sm:$0xff] %v243_v50  ;;  %248 = vst [vmem:[%s157_s26 + $0x8] sm:$0xff] %v244_v51 }
 0x15e   : > { %v241_v52 = vpop.permute.xlu1 %240 }
 0x15f   : > { %v245_v53 = vmul.f32 %v241_v52, %v445_v2  ;;  %v246_v54 = vmul.f32 %v241_v52, %v449_v4 }
 0x161   : > { %249 = vst [vmem:[%s157_s26 + $0x10] sm:$0xff] %v245_v53  ;;  %250 = vst [vmem:[%s157_s26 + $0x18] sm:$0xff] %v246_v54 }
 0x162 PF: > { %s13_s9 = sadd.s32 1, %s392_s9  }
 0x163   : > { %p10_p1 = scmp.ge.s32.totalorder %s13_s9, 4  }
 0x165   :  { %12 = sbr.rel (!%p10_p1) target bundleno = 1 (0x1), region = 63 }
 0x16a   :  { %272 = vsyncpa [#allocation3], 1 }
 0x16b   :  { %274 = vsyncpa [#allocation3 + $0x1], 1 }

</bundles_post_ra>
